<compile_context>
chip_gen: v5e
topology: v5e:2x2
jax: 0.10.0
libtpu: 0.0.40
codegen_flags: <defaults>
</compile_context>

<pallas_src>
import math

import jax
import jax.numpy as jnp
from jax.experimental import pallas as pl
from jax.experimental.pallas import tpu as pltpu


def ccm_kernel(x_ref, mt_ref, bias_ref, gamma_ref, o_ref):
    # x_ref block: (1, c_blk, HW)  NCHW-native: channels on sublanes, flattened
    #              spatial on lanes (lane-dense whenever H*W is a multiple of 128)
    # mt_ref:      (HW, HW)        constant M^T, VMEM-resident across the grid
    # bias_ref:    (1, HW)         bh[i] + bw[j] at column i*W + j
    # gamma_ref:   (1,) scalar in SMEM
    x = x_ref[0]                                            # (c_blk, HW), native dtype

    # con[c, r] = sum_r' x[c, r'] * M[r, r'] + bias[r]  -- one GEMM per block,
    # native-dtype operands, f32 accumulation on the MXU.
    con = jnp.dot(x, mt_ref[...], preferred_element_type=jnp.float32)
    con = con + bias_ref[...]                               # broadcast over sublanes

    # softmax over the flattened spatial axis (lanes), per channel (sublane row)
    m = jnp.max(con, axis=-1, keepdims=True)
    e = jnp.exp(con - m)
    s = jnp.sum(e, axis=-1, keepdims=True)
    att = e * pl.reciprocal(s, approx=True)                 # EUP slot

    gamma = gamma_ref[0]
    o_ref[0] = (x * (gamma * att + 1.0)).astype(o_ref.dtype)


def _channel_block(B, C, HW, itemsize):
    # Channels live on sublanes: the block height must be a multiple of 8 or
    # the full channel dim (the (8,128) rule). Target ~2 MB per x block so
    # double-buffered in+out blocks stay well under every generation's scoped
    # VMEM, and keep >= 2 grid programs when possible (v7x has 2 TensorCores).
    if C % 8 != 0:
        return C                      # must take the whole (legal) channel dim
    blk = C
    target_bytes = 2 * 1024 * 1024
    while blk % 16 == 0 and blk * HW * itemsize > target_bytes:
        blk //= 2
    if B == 1 and blk == C and blk % 16 == 0:
        blk //= 2                     # avoid a 1-program grid on v7x
    return blk


def ccm_forward(x, wh, bh, ww, bw, gamma):
    B, C, H, W = x.shape
    HW = H * W

    # Dense-M design is intended for CCM's small spatial extents.
    assert HW * HW * 4 <= 8 * 1024 * 1024, (
        "dense (HW,HW) mixing matrix too large for VMEM; use the factored form")

    f32 = jnp.float32
    wh32, ww32 = wh.astype(f32), ww.astype(f32)
    # M[i*W+j, k*W+j'] = Wh[i,k]*d_{jj'} + d_{ik}*Ww[j,j'];  kernel uses M^T.
    M = (jnp.kron(wh32, jnp.eye(W, dtype=f32))
         + jnp.kron(jnp.eye(H, dtype=f32), ww32))            # (HW, HW)
    MT = M.T.astype(x.dtype)                                 # native MXU operand dtype
    bias_row = (bh.astype(f32)[:, None]
                + bw.astype(f32)[None, :]).reshape(1, HW)    # (1, HW)

    # NCHW-native: only a free reshape, no transposes in or out.
    x_flat = x.reshape(B, C, HW)

    c_blk = _channel_block(B, C, HW, x.dtype.itemsize)
    grid = (B, C // c_blk)

    vmem_need = (4 * c_blk * HW * x.dtype.itemsize           # 2x-buffered in + out
                 + 2 * HW * HW * MT.dtype.itemsize           # M^T buffers
                 + 2 * 8 * HW * 4                            # padded bias row
                 + (2 << 20))                                # slack
    vmem_limit = max(int(vmem_need), 16 * 1024 * 1024)

    out_flat = pl.pallas_call(
        ccm_kernel,
        out_shape=jax.ShapeDtypeStruct((B, C, HW), x.dtype),
        grid_spec=pltpu.PrefetchScalarGridSpec(
            num_scalar_prefetch=0,
            grid=grid,
            in_specs=[
                pl.BlockSpec((1, c_blk, HW), lambda b, cb: (b, cb, 0)),
                pl.BlockSpec((HW, HW), lambda b, cb: (0, 0)),
                pl.BlockSpec((1, HW), lambda b, cb: (0, 0)),
                pl.BlockSpec(memory_space=pltpu.MemorySpace.SMEM),
            ],
            out_specs=pl.BlockSpec((1, c_blk, HW), lambda b, cb: (b, cb, 0)),
        ),
        compiler_params=pltpu.CompilerParams(
            dimension_semantics=("parallel", "parallel"),
            vmem_limit_bytes=vmem_limit,
        ),
    )(x_flat, MT, bias_row, gamma)

    return out_flat.reshape(B, C, H, W)


def ccm_reference(x, wh, bh, ww, bw, gamma):
    B, C, H, W = x.shape
    con_h = jnp.einsum("ik,bckj->bcij", wh, x) + bh[None, None, :, None]
    con_w = jnp.einsum("bcik,jk->bcij", x, ww) + bw[None, None, None, :]
    con = (con_h + con_w).reshape(B, C, H * W)
    att = jax.nn.softmax(con, axis=-1).reshape(B, C, H, W)
    return att * x * gamma[0] + x


if __name__ == "__main__":
    B, C, H, W = 2, 4, 16, 16

    key = jax.random.PRNGKey(0)
    k1, k2, k3, k4, k5 = jax.random.split(key, 5)

    x = jax.random.normal(k1, (B, C, H, W), dtype=jnp.float32)

    # Deterministic param init mimicking PyTorch Conv2d defaults
    # (kaiming-uniform with bound 1/sqrt(fan_in); fan_in = channels * 1 * 1).
    bnd_h = 1.0 / math.sqrt(H)
    bnd_w = 1.0 / math.sqrt(W)
    wh = jax.random.uniform(k2, (H, H), jnp.float32, -bnd_h, bnd_h)  # con_h weight (squeezed 1x1)
    bh = jax.random.uniform(k3, (H,), jnp.float32, -bnd_h, bnd_h)    # con_h bias
    ww = jax.random.uniform(k4, (W, W), jnp.float32, -bnd_w, bnd_w)  # con_w weight (squeezed 1x1)
    bw = jax.random.uniform(k5, (W,), jnp.float32, -bnd_w, bnd_w)    # con_w bias
    gamma = jnp.ones((1,), dtype=jnp.float32)                        # nn.Parameter(torch.ones(1))

    out = jax.block_until_ready(ccm_forward(x, wh, bh, ww, bw, gamma))

    ref = ccm_reference(x, wh, bh, ww, bw, gamma)
    assert out.shape == (B, C, H, W)
    assert jnp.allclose(out, ref, atol=1e-4, rtol=1e-4), "mismatch vs reference"

    print("KERNEL_OK")
</pallas_src>

<mosaic_0001>
module attributes {stable_mosaic.version = 11 : i64} {
  func.func @ccm_kernel(%arg0: i32, %arg1: i32, %arg2: memref<1x4x256xf32, #tpu.memory_space<vmem>>, %arg3: memref<256x256xf32, #tpu.memory_space<vmem>>, %arg4: memref<1x256xf32, #tpu.memory_space<vmem>>, %arg5: memref<1xf32, #tpu.memory_space<smem>>, %arg6: memref<1x4x256xf32, #tpu.memory_space<vmem>>) attributes {dimension_semantics = [#tpu.dimension_semantics<parallel>, #tpu.dimension_semantics<parallel>], iteration_bounds = array<i64: 2, 1>, scalar_prefetch = 0 : i64, scratch_operands = 0 : i64, tpu.core_type = #tpu.core_type<tc>, window_params = [{transform_indices = @transform_0, window_bounds = array<i64: 1, 4, 256>}, {pipeline_mode = #tpu.pipeline_mode<synchronous>, transform_indices = @transform_1, window_bounds = array<i64: 256, 256>}, {pipeline_mode = #tpu.pipeline_mode<synchronous>, transform_indices = @transform_2, window_bounds = array<i64: 1, 256>}, {transform_indices = @transform_3, window_bounds = array<i64: 1>}, {transform_indices = @transform_4, window_bounds = array<i64: 1, 4, 256>}]} {
    %c0 = arith.constant 0 : index
    %c0_0 = arith.constant 0 : index
    %c0_1 = arith.constant 0 : index
    %0 = vector.load %arg2[%c0, %c0_0, %c0_1] : memref<1x4x256xf32, #tpu.memory_space<vmem>>, vector<1x4x256xf32>
    %1 = vector.shape_cast %0 : vector<1x4x256xf32> to vector<4x256xf32>
    %c0_2 = arith.constant 0 : index
    %c0_3 = arith.constant 0 : index
    %2 = vector.load %arg3[%c0_2, %c0_3] : memref<256x256xf32, #tpu.memory_space<vmem>>, vector<256x256xf32>
    %cst = arith.constant dense<0.000000e+00> : vector<4x256xf32>
    %3 = tpu.matmul %1, %2, %cst {dimension_numbers = #tpu.dot_dimension_numbers<[1], [0], [0], [1], [0, 0, 1, 1], [], []>} : vector<4x256xf32>, vector<256x256xf32>, vector<4x256xf32> -> vector<4x256xf32>
    %c0_4 = arith.constant 0 : index
    %c0_5 = arith.constant 0 : index
    %4 = vector.load %arg4[%c0_4, %c0_5] : memref<1x256xf32, #tpu.memory_space<vmem>>, vector<1x256xf32>
    %5 = vector.broadcast %4 : vector<1x256xf32> to vector<4x256xf32>
    %6 = arith.addf %3, %5 : vector<4x256xf32>
    %cst_6 = arith.constant dense<0xFF800000> : vector<4xf32>
    %7 = vector.multi_reduction <maximumf>, %6, %cst_6 [1] : vector<4x256xf32> to vector<4xf32>
    %8 = vector.shape_cast %7 : vector<4xf32> to vector<4x1xf32>
    %9 = vector.broadcast %8 : vector<4x1xf32> to vector<4x256xf32>
    %10 = arith.subf %6, %9 : vector<4x256xf32>
    %11 = math.exp %10 : vector<4x256xf32>
    %cst_7 = arith.constant dense<0.000000e+00> : vector<4xf32>
    %12 = vector.multi_reduction <add>, %11, %cst_7 [1] : vector<4x256xf32> to vector<4xf32>
    %13 = vector.shape_cast %12 : vector<4xf32> to vector<4x1xf32>
    %14 = tpu.reciprocal %13 {approx = true} : vector<4x1xf32> -> vector<4x1xf32>
    %15 = vector.broadcast %14 : vector<4x1xf32> to vector<4x256xf32>
    %16 = arith.mulf %11, %15 : vector<4x256xf32>
    %c0_8 = arith.constant 0 : index
    %17 = memref.load %arg5[%c0_8] : memref<1xf32, #tpu.memory_space<smem>>
    %18 = vector.broadcast %17 : f32 to vector<4x256xf32>
    %19 = arith.mulf %18, %16 : vector<4x256xf32>
    %cst_9 = arith.constant 1.000000e+00 : f32
    %20 = vector.broadcast %cst_9 : f32 to vector<4x256xf32>
    %21 = arith.addf %19, %20 : vector<4x256xf32>
    %22 = arith.mulf %1, %21 : vector<4x256xf32>
    %c0_10 = arith.constant 0 : index
    %c0_11 = arith.constant 0 : index
    %c0_12 = arith.constant 0 : index
    %23 = vector.load %arg6[%c0_10, %c0_11, %c0_12] : memref<1x4x256xf32, #tpu.memory_space<vmem>>, vector<1x4x256xf32>
    %24 = vector.shape_cast %23 : vector<1x4x256xf32> to vector<4x256xf32>
    %25 = vector.shape_cast %22 : vector<4x256xf32> to vector<1x4x256xf32>
    tpu.vector_store %arg6[%c0_10, %c0_11, %c0_12], %25 {strides = array<i32>} : memref<1x4x256xf32, #tpu.memory_space<vmem>>, vector<1x4x256xf32>,
    return
  }
  func.func @transform_0(%arg0: i32, %arg1: i32) -> (i32, i32, i32) {
    %c0_i32 = arith.constant 0 : i32
    %c0_i32_0 = arith.constant 0 : i32
    return %arg0, %arg1, %c0_i32 : i32, i32, i32
  }
  func.func @transform_1(%arg0: i32, %arg1: i32) -> (i32, i32) {
    %c0_i32 = arith.constant 0 : i32
    %c0_i32_0 = arith.constant 0 : i32
    %c0_i32_1 = arith.constant 0 : i32
    return %c0_i32, %c0_i32_0 : i32, i32
  }
  func.func @transform_2(%arg0: i32, %arg1: i32) -> (i32, i32) {
    %c0_i32 = arith.constant 0 : i32
    %c0_i32_0 = arith.constant 0 : i32
    %c0_i32_1 = arith.constant 0 : i32
    return %c0_i32, %c0_i32_0 : i32, i32
  }
  func.func @transform_3(%arg0: i32, %arg1: i32) -> i32 {
    %c0_i32 = arith.constant 0 : i32
    %c0_i32_0 = arith.constant 0 : i32
    return %c0_i32 : i32
  }
  func.func @transform_4(%arg0: i32, %arg1: i32) -> (i32, i32, i32) {
    %c0_i32 = arith.constant 0 : i32
    %c0_i32_0 = arith.constant 0 : i32
    return %arg0, %arg1, %c0_i32 : i32, i32, i32
  }
}

</mosaic_0001>

<bundles_post_ra>
// kernel: tpu_custom_call.1
= control target key start
LH: loop header
LB: loop body
LE: loop exit
PB: predicated region body
PF: predicated region fallthrough
CT: control target
= control target key end

     0   :  { %s996_s0 = inlined_call_operand.hbm [shape: f32[2,4,256], index: 0, kind: input, shape index: {}]   ;;  %s997_s1 = inlined_call_operand.hbm [shape: f32[256,256], index: 1, kind: input, shape index: {}]   ;;  %s998_s2 = inlined_call_operand.vmem [shape: f32[1,256], index: 2, kind: input, shape index: {}]   ;;  %s999_s3 = inlined_call_operand.<no memory space> [shape: f32[1], index: 3, kind: input, shape index: {}]   ;;  %s1000_s4 = inlined_call_operand.hbm [shape: f32[2,4,256], index: 4, kind: output, shape index: {}]  }
   0x1   :  { %9 = sst [smem:[#allocation2]] %s999_s3 }
   0x2   :  { %10 = vsyncpa [#allocation4], 0 }
   0x3   :  { %12 = vsyncpa [#allocation4 + $0x1], 0 }
   0x4   :  { %13 = vsyncpa [#allocation7], 0 }
   0x5   :  { %14 = vsyncpa [#allocation5], 0 }
   0x6   :  { %16 = vsyncpa [#allocation5 + $0x1], 0  ;;  %s834_s17 = smov 0   ;;  %s836_s18 = smov 0  }
   0x7   :  { %s838_s19 = smov 0   ;;  %s840_s20 = smov 0  }
   0x8   :  { %s842_s21 = smov 0   ;;  %s844_s22 = smov 0  }
   0x9 LB: > { %s555_s3 = sadd.s32 4294967295, %s801_s22   ;;  %p557_p0 = scmp.ge.s32.totalorder %s801_s22, 1  ;;  %s801_s22 = sphi %s844_s22, %s22_s22   ;;  %s797_s21 = sphi %s842_s21, %s1011_s21   ;;  %s793_s20 = sphi %s840_s20, %s1010_s20   ;;  %s789_s19 = sphi %s838_s19, %s1009_s19   ;;  %s785_s18 = sphi %s836_s18, %s1008_s18   ;;  %s781_s17 = sphi %s834_s17, %s1007_s17  }
   0xa   : > { %p866_p1 = scmp.eq.s32.totalorder %s555_s3, 0  ;;  %p158_p2 = scmp.lt.s32.totalorder %s801_s22, 3 }
   0xb   : > { %s169_s26 = sshll.u32 %s997_s1, 4  ;;  %s803_s28 = smov [#allocation6]   ;;  %s170_s26 = int_to_ptr.hbm [resolvable:$true] %s169_s26 }
   0xc   : > { %p874_p3 = pnand %p557_p0, %p158_p2  ;;  %s171_s29 = sshll.u32 %s803_s28, 4  ;;  %s172_s29 = int_to_ptr.vmem [resolvable:$true] %s171_s29 }
   0xd   : > { %p559_p6 = scmp.ge.s32.totalorder %s801_s22, 2  ;;  %s804_s30 = smov 256  }
   0xe   : > { %p582_p4 = pneg %p874_p3  ;;  %s805_s5 = smov 16  }
   0xf   : > { %s556_s6 = sadd.s32 4294967294, %s801_s22   ;;  %s34_s7 = sadd.s32 1, %s797_s21 }
  0x10   : > { %p583_p5 = pnand %p582_p4, %p866_p1  ;;  %s43_s8 = sadd.s32 1, %s789_s19 }
  0x11   : > { %p36_p7 = scmp.ge.s32.totalorder %s34_s7, 2  ;;  %p50_p8 = scmp.ne.s32.totalorder %s789_s19, %s785_s18 }
  0x12   : > { %585 = dma.hbm_to_vmem [thread:$0]  (!%p583_p5), %s170_s26, 8192, %s172_s29, [#allocation7], %s804_s30, %s804_s30, %s805_s5  }
  0x13   : > { %p51_p9 = scmp.eq.s32.totalorder %s801_s22, 0  ;;  %p56_p10 = scmp.ne.s32.totalorder %s785_s18, %s781_s17 }
  0x14   : > { %s1013_s7 = smov (%p36_p7, %s34_s7), 0  ;;  %p145_p13 = scmp.eq.s32.totalorder %s555_s3, 1 }
  0x15   : > { %p893_p11 = por %p51_p9, %p50_p8  ;;  %p899_p12 = por %p866_p1, %p56_p10 }
  0x16   : > { %s38_s11 = ssub.s32 %s797_s21, %s1013_s7  ;;  %p151_p2 = scmp.eq.s32.totalorder %s556_s6, 1 }
  0x17   : > { %p41_p0 = scmp.eq.s32.totalorder %s38_s11, 0  ;;  %p905_p4 = por %p145_p13, %p50_p8 }
  0x18   : > { %p595_p5 = scmp.lt.s32.totalorder %s801_s22, 2  ;;  %p913_p7 = por %p151_p2, %p56_p10 }
  0x19   : > { %s911_s13 = scalar_select %p41_p0, %s789_s19, %s43_s8  }
  0x1a   : > { %s191_s15 = sand.u32 1, %s789_s19   ;;  %s572_s24 = sshll.u32 %s797_s21, 3 }
  0x1b   : > { %s560_s16 = sshll.u32 %s191_s15, 3  ;;  %s202_s3 = scalar_lea.hbm %s996_s0, %s572_s24 }
  0x1c   : > { %s195_s28 = scalar_lea.vmem [#allocation3], %s560_s16  ;;  %s204_s30 = sshll.u32 %s202_s3, 4  ;;  %s205_s30 = int_to_ptr.hbm [resolvable:$true] %s204_s30 }
  0x1d   : > { %s206_s29 = sshll.u32 %s195_s28, 4  ;;  %p587_p8 = pnand %p595_p5, %p893_p11  ;;  %s207_s29 = int_to_ptr.vmem [resolvable:$true] %s206_s29 }
  0x1e   : > { %s192_s5 = scalar_lea.sflag [#allocation4], %s191_s15  ;;  %215 = sbr.rel (%p874_p3) target bundleno = 477 (0x1dd), region = 36 }
  0x1f   : > { %589 = dma.hbm_to_vmem [thread:$0]  (!%p587_p8), %s205_s30, 128, %s207_s29, %s192_s5  }
  0x20   : > { %s927_s6 = sand.u32 (!%p874_p3), 1, %s785_s18  }
  0x21   : > { %s564_s8 = sshll.u32 (!%p874_p3), %s927_s6, 3  ;;  %s218_s11 = scalar_lea.sflag (!%p874_p3), [#allocation4], %s927_s6 }
  0x22   : > { %s933_s16 = scalar_lea.vmem (!%p874_p3), [#allocation3], %s564_s8 }
  0x23   : > { %768 = dma.done.wait (%p899_p12), %s218_s11, 128  }
  0x24   : > { %770 = vsyncadd (%p899_p12), %s218_s11, 4294967168 }
  0x25   : > { %772 = dma.done.wait (%p866_p1), [#allocation7], 8192  }
  0x26   : > { %774 = vsyncadd (%p866_p1), [#allocation7], 4294959104  ;;  %v284_v0 = vld [vmem:[#allocation6 + $0xf8] sm:$0xff]  ;;  %v282_v1 = vld [vmem:[#allocation6 + $0xe8] sm:$0xff]  ;;  %vm409_vm0 = vcmask 1043456   ;;  %s429_s9 = sld [smem:[#allocation2]] }
  0x27   : > { %v316_v2 = vld [vmem:[#allocation6 + $0x1f8] sm:$0xff]  ;;  %369 = vmatpush.msra.mxu2 %v284_v0  ;;  %v314_v3 = vld [vmem:[#allocation6 + $0x1e8] sm:$0xff]  ;;  %v283_v4 = vld [vmem:[#allocation6 + $0xf0] sm:$0xff]  ;;  %s573_s10 = sshll.u32 %s793_s20, 3  ;;  %s251_s26 = scalar_lea.vmem [#allocation8], %s564_s8 }
  0x28   : > { %389 = vmatpush.msra.mxu3 %v316_v2  ;;  %v280_v5 = vld [vmem:[#allocation6 + $0xd8] sm:$0xff]  ;;  %329 = vmatpush.msra.mxu0 %v283_v4  ;;  %v281_v7 = vld [vmem:[#allocation6 + $0xe0] sm:$0xff]  ;;  %v278_v8 = vld [vmem:[#allocation6 + $0xc8] sm:$0xff]  ;;  %s456_s25 = scalar_lea.hbm %s1000_s4, %s573_s10  ;;  %s458_s3 = sshll.u32 %s251_s26, 4  ;;  %s459_s3 = int_to_ptr.vmem [resolvable:$true] %s458_s3 }
  0x29   : > { %v312_v6 = vld [vmem:[#allocation6 + $0x1d8] sm:$0xff]  ;;  %370 = vmatpush.msra.mxu2 %v282_v1  ;;  %v315_v9 = vld [vmem:[#allocation6 + $0x1f0] sm:$0xff]  ;;  %v310_v10 = vld [vmem:[#allocation6 + $0x1c8] sm:$0xff]  ;;  %s460_s28 = sshll.u32 %s456_s25, 4  ;;  %s443_s20 = scalar_lea.sflag [#allocation5], %s927_s6  ;;  %s461_s28 = int_to_ptr.hbm [resolvable:$true] %s460_s28 }
  0x2a   : > { %390 = vmatpush.msra.mxu3 %v314_v3  ;;  %330 = vmatpush.msra.mxu0 %v281_v7  ;;  %v279_v11 = vld [vmem:[#allocation6 + $0xd0] sm:$0xff]  ;;  %v313_v12 = vld [vmem:[#allocation6 + $0x1e0] sm:$0xff]  ;;  %v276_v15 = vld [vmem:[#allocation6 + $0xb8] sm:$0xff]  ;;  %s729_s29 = sshra.s32 %s461_s28, 4  ;;  %s735_s8 = scalar_lea.hbm %s1000_s4, 16  ;;  %s730_s29 = int_to_ptr.hbm [resolvable:$true] %s729_s29 }
  0x2b   : > { %349 = vmatpush.msra.mxu1 %v315_v9  ;;  %371 = vmatpush.msra.mxu2 %v280_v5  ;;  %v277_v13 = vld [vmem:[#allocation6 + $0xc0] sm:$0xff]  ;;  %v311_v14 = vld [vmem:[#allocation6 + $0x1d0] sm:$0xff]  ;;  %v308_v16 = vld [vmem:[#allocation6 + $0x1b8] sm:$0xff]  ;;  %s731_s30 = scalar_lea.hbm %s730_s29, 8  ;;  %p736_p10 = scmp.lt.s32.totalorder %s730_s29, %s1000_s4 }
  0x2c   : > { %391 = vmatpush.msra.mxu3 %v312_v6  ;;  %331 = vmatpush.msra.mxu0 %v279_v11  ;;  %v275_v17 = vld [vmem:[#allocation6 + $0xb0] sm:$0xff]  ;;  %v309_v18 = vld [vmem:[#allocation6 + $0x1c0] sm:$0xff]  ;;  %v274_v19 = vld [vmem:[#allocation6 + $0xa8] sm:$0xff]  ;;  %p732_p1 = scmp.ne.s32.totalorder %s730_s29, %s731_s30  ;;  %p737_p11 = scmp.lt.s32.totalorder %s735_s8, %s731_s30 }
  0x2d   : > { %350 = vmatpush.msra.mxu1 %v313_v12  ;;  %372 = vmatpush.msra.mxu2 %v278_v8  ;;  %v306_v20 = vld [vmem:[#allocation6 + $0x1a8] sm:$0xff]  ;;  %v273_v21 = vld [vmem:[#allocation6 + $0xa0] sm:$0xff]  ;;  %v307_v22 = vld [vmem:[#allocation6 + $0x1b0] sm:$0xff] }
  0x2e   : > { %392 = vmatpush.msra.mxu3 %v310_v10  ;;  %332 = vmatpush.msra.mxu0 %v277_v13  ;;  %v272_v23 = vld [vmem:[#allocation6 + $0x98] sm:$0xff]  ;;  %v271_v25 = vld [vmem:[#allocation6 + $0x90] sm:$0xff]  ;;  %v305_v26 = vld [vmem:[#allocation6 + $0x1a0] sm:$0xff]  ;;  %p733_p3 = pnand %p732_p1, %p905_p4  ;;  %p738_p12 = por %p737_p11, %p736_p10 }
  0x2f   : > { %351 = vmatpush.msra.mxu1 %v311_v14  ;;  %373 = vmatpush.msra.mxu2 %v276_v15  ;;  %v304_v24 = vld [vmem:[#allocation6 + $0x198] sm:$0xff]  ;;  %v270_v27 = vld [vmem:[#allocation6 + $0x88] sm:$0xff]  ;;  %v269_v29 = vld [vmem:[#allocation6 + $0x80] sm:$0xff] }
  0x30   : > { %393 = vmatpush.msra.mxu3 %v308_v16  ;;  %333 = vmatpush.msra.mxu0 %v275_v17  ;;  %v302_v28 = vld [vmem:[#allocation6 + $0x188] sm:$0xff]  ;;  %v303_v30 = vld [vmem:[#allocation6 + $0x190] sm:$0xff]  ;;  %v268_v31 = vld [vmem:[#allocation6 + $0x78] sm:$0xff]  ;;  %p734_p9 = pneg %p733_p3 }
  0x31   : > { %352 = vmatpush.msra.mxu1 %v309_v18  ;;  %374 = vmatpush.msra.mxu2 %v274_v19  ;;  %v300_v32 = vld [vmem:[#allocation6 + $0x178] sm:$0xff]  ;;  %v267_v33 = vld [vmem:[#allocation6 + $0x70] sm:$0xff]  ;;  %v301_v34 = vld [vmem:[#allocation6 + $0x180] sm:$0xff] }
  0x32   : > { %394 = vmatpush.msra.mxu3 %v306_v20  ;;  %334 = vmatpush.msra.mxu0 %v273_v21  ;;  %v266_v35 = vld [vmem:[#allocation6 + $0x68] sm:$0xff]  ;;  %v265_v37 = vld [vmem:[#allocation6 + $0x60] sm:$0xff]  ;;  %v299_v38 = vld [vmem:[#allocation6 + $0x170] sm:$0xff]  ;;  %p739_p13 = pnand %p738_p12, %p734_p9 }
  0x33   : > { %353 = vmatpush.msra.mxu1 %v307_v22  ;;  %375 = vmatpush.msra.mxu2 %v272_v23  ;;  %v298_v36 = vld [vmem:[#allocation6 + $0x168] sm:$0xff]  ;;  %v264_v39 = vld [vmem:[#allocation6 + $0x58] sm:$0xff]  ;;  %v263_v42 = vld [vmem:[#allocation6 + $0x50] sm:$0xff] }
  0x34   : > { %395 = vmatpush.msra.mxu3 %v304_v24  ;;  %335 = vmatpush.msra.mxu0 %v271_v25  ;;  %v296_v40 = vld [vmem:[#allocation6 + $0x158] sm:$0xff]  ;;  %v297_v43 = vld [vmem:[#allocation6 + $0x160] sm:$0xff]  ;;  %v262_v44 = vld [vmem:[#allocation6 + $0x48] sm:$0xff] }
  0x35   : > { %354 = vmatpush.msra.mxu1 %v305_v26  ;;  %376 = vmatpush.msra.mxu2 %v270_v27  ;;  %v944_v41 = vld [vmem:[%s933_s16] sm:$0xff]  ;;  %v294_v45 = vld [vmem:[#allocation6 + $0x148] sm:$0xff]  ;;  %v261_v46 = vld [vmem:[#allocation6 + $0x40] sm:$0xff] }
  0x36   : > { %396 = vmatpush.msra.mxu3 %v302_v28  ;;  %336 = vmatpush.msra.mxu0 %v269_v29  ;;  %324 = vst [vmem:[#allocation1] ss:$2 sm:$0xff] %v944_v41  ;;  %v295_v47 = vld [vmem:[#allocation6 + $0x150] sm:$0xff]  ;;  %v260_v48 = vld [vmem:[#allocation6 + $0x38] sm:$0xff]  ;;  %v293_v51 = vld [vmem:[#allocation6 + $0x140] sm:$0xff]  ;;  %v430_v29 = vstv %s429_s9 }
  0x37   : > { %355 = vmatpush.msra.mxu1 %v303_v30  ;;  %377 = vmatpush.msra.mxu2 %v268_v31  ;;  %v292_v49 = vld [vmem:[#allocation6 + $0x138] sm:$0xff]  ;;  %v259_v50 = vld [vmem:[#allocation6 + $0x30] sm:$0xff]  ;;  %v258_v52 = vld [vmem:[#allocation6 + $0x28] sm:$0xff] }
  0x38   : > { %397 = vmatpush.msra.mxu3 %v300_v32  ;;  %337 = vmatpush.msra.mxu0 %v267_v33  ;;  %v290_v53 = vld [vmem:[#allocation6 + $0x128] sm:$0xff]  ;;  %v257_v54 = vld [vmem:[#allocation6 + $0x20] sm:$0xff]  ;;  %v291_v55 = vld [vmem:[#allocation6 + $0x130] sm:$0xff] }
  0x39   : > { %356 = vmatpush.msra.mxu1 %v301_v34  ;;  %378 = vmatpush.msra.mxu2 %v266_v35  ;;  %v256_v56 = vld [vmem:[#allocation6 + $0x18] sm:$0xff]  ;;  %v255_v58 = vld [vmem:[#allocation6 + $0x10] sm:$0xff]  ;;  %v289_v59 = vld [vmem:[#allocation6 + $0x120] sm:$0xff] }
  0x3a   : > { %398 = vmatpush.msra.mxu3 %v298_v36  ;;  %338 = vmatpush.msra.mxu0 %v265_v37  ;;  %v288_v57 = vld [vmem:[#allocation6 + $0x118] sm:$0xff]  ;;  %v254_v60 = vld [vmem:[#allocation6 + $0x8] sm:$0xff]  ;;  %v253_v0 = vld [vmem:[#allocation6] sm:$0xff] }
  0x3b   : > { %357 = vmatpush.msra.mxu1 %v299_v38  ;;  %379 = vmatpush.msra.mxu2 %v264_v39  ;;  %v286_v61 = vld [vmem:[#allocation6 + $0x108] sm:$0xff]  ;;  %v287_v1 = vld [vmem:[#allocation6 + $0x110] sm:$0xff]  ;;  %v285_v2 = vld [vmem:[#allocation6 + $0x100] sm:$0xff] }
  0x3c   : > { %399 = vmatpush.msra.mxu3 %v296_v40  ;;  %339 = vmatpush.msra.mxu0 %v263_v42  ;;  %v317_v3 = vld [vmem:[%s998_s2] sm:$0x3] }
  0x3d   : > { %358 = vmatpush.msra.mxu1 %v297_v43  ;;  %380 = vmatpush.msra.mxu2 %v262_v44  ;;  %v325_v62 = vld.sshfl [vmem:[#allocation1] sm:$0xff pattern:$0x75316420]  ;;  %v326_v63 = vld.sshfl [vmem:[#allocation1 + $0x8] sm:$0xff pattern:$0x75316420] }
  0x3e   : > { %400 = vmatpush.msra.mxu3 %v294_v45  ;;  %340 = vmatpush.msra.mxu0 %v261_v46  ;;  %v319_v4 = vperm.slane %v317_v3, 0  ;;  %v320_v7 = vperm.slane %v317_v3, 1 }
  0x3f   : > { %359 = vmatpush.msra.mxu1 %v295_v47  ;;  %381 = vmatpush.msra.mxu2 %v260_v48 }
  0x40   : > { %401 = vmatpush.msra.mxu3 %v292_v49  ;;  %341 = vmatpush.msra.mxu0 %v259_v50 }
  0x41   : > { %360 = vmatpush.msra.mxu1 %v293_v51  ;;  %382 = vmatpush.msra.mxu2 %v258_v52 }
  0x42   : > { %402 = vmatpush.msra.mxu3 %v290_v53  ;;  %342 = vmatpush.msra.mxu0 %v257_v54 }
  0x43   : > { %361 = vmatpush.msra.mxu1 %v291_v55  ;;  %383 = vmatpush.msra.mxu2 %v256_v56 }
  0x44   : > { %403 = vmatpush.msra.mxu3 %v288_v57  ;;  %343 = vmatpush.msra.mxu0 %v255_v58 }
  0x45   : > { %362 = vmatpush.msra.mxu1 %v289_v59  ;;  %384 = vmatpush.msra.mxu2 %v254_v60 }
  0x46   : > { %404 = vmatpush.msra.mxu3 %v286_v61  ;;  %385 = vmatmul.f32.vlgmr.msra.gmra.mxu2 %v325_v62 }
  0x47   : > { %405 = vmatmul.f32.vlgmr.msra.gmra.mxu3 %v326_v63  ;;  %344 = vmatpush.msra.mxu0 %v253_v0 }
  0x48   : > { %363 = vmatpush.msra.mxu1 %v287_v1  ;;  %345 = vmatmul.f32.vlgmr.msra.gmra.mxu0 %v325_v62 }
  0x4a   : > { %364 = vmatpush.msra.mxu1 %v285_v2 }
  0x4b   : > { %365 = vmatmul.f32.vlgmr.msra.gmra.mxu1 %v326_v63 }
  0xc5   : > { %v346_v5 = vpop.f32.mrf.mxu0 }
  0xc6   : > { %v347_v6 = vadd.f32 %v346_v5, %v319_v4 }
  0xc8   : > { %v366_v8 = vpop.f32.mrf.mxu1 }
  0xc9   : > { %v367_v9 = vadd.f32 %v366_v8, %v347_v6  ;;  %v386_v10 = vpop.f32.mrf.mxu2 }
  0xca   : > { %v406_v11 = vpop.f32.mrf.mxu3  ;;  %v387_v12 = vadd.f32 %v386_v10, %v320_v7 }
  0xcb   : > { %v410_v14 = vsel %vm409_vm0, %v367_v9, -inf }
  0xcc   : > { %v407_v13 = vadd.f32 %v406_v11, %v387_v12 }
  0xce   : > { %v411_v15 = vsel %vm409_vm0, %v407_v13, -inf }
  0xcf   : > { %v412_v16 = vmax.f32 %v410_v14, %v411_v15 }
  0xd1   : > { %413 = vmax.xlane.f32.xlu0 %v412_v16 }
 0x144   : > { %v414_v17 = vpop.xlane.xlu0 %413 }
 0x145   : > { %v415_v18 = vsub.f32 %v367_v9, %v414_v17  ;;  %v416_v19 = vsub.f32 %v407_v13, %v414_v17 }
 0x147   : > { %v417_v20 = vmul.f32 1.442695, %v415_v18  ;;  %v419_v21 = vmul.f32 1.442695, %v416_v19 }
 0x149   : > { %649 = vpow2.f32 %v417_v20 }
 0x14a   : > { %651 = vpow2.f32 %v419_v21 }
 0x14f   : > { %v650_v22 = vpop.eup %649 }
 0x150   : > { %v652_v23 = vpop.eup %651  ;;  %v421_v24 = vsel %vm409_vm0, %v650_v22, 0.0 }
 0x151   : > { %v422_v25 = vsel %vm409_vm0, %v652_v23, 0.0 }
 0x152   : > { %v423_v26 = vadd.f32 %v422_v25, %v421_v24 }
 0x154   : > { %424 = vadd.xlane.f32.xlu0 %v423_v26 }
 0x1c7   : > { %v425_v27 = vpop.xlane.xlu0 %424 }
 0x1c8   : > { %653 = vrcp.f32 %v425_v27 }
 0x1ce   : > { %v654_v28 = vpop.eup %653 }
 0x1cf   : > { %v427_v30 = vmul.f32 %v654_v28, %v650_v22  ;;  %v428_v31 = vmul.f32 %v654_v28, %v652_v23 }
 0x1d1   : > { %v431_v32 = vmul.f32 %v430_v29, %v427_v30  ;;  %v432_v33 = vmul.f32 %v430_v29, %v428_v31 }
 0x1d3   : > { %v434_v34 = vadd.f32 1.0, %v432_v33  ;;  %v433_v35 = vadd.f32 1.0, %v431_v32 }
 0x1d5   : > { %v437_v36 = vrot.slane %v434_v34, 4 }
 0x1d7   : > { %v438_v37 = vsel %vm409_vm0, %v433_v35, %v437_v36 }
 0x1d8   : > { %v440_v38 = vmul.f32 %v438_v37, %v944_v41 }
 0x1da   : > { %441 = vst [vmem:[%s251_s26] sm:$0xff] %v440_v38 }
 0x1db   : > { %742 = shalt.err (!%p739_p13)
}
 0x1dc   : > { %580 = dma.vmem_to_hbm [thread:$0]  (%p905_p4), %s459_s3, 128, %s461_s28, %s443_s20  }
 0x1dd PF: > { %s472_s6 = sand.u32 1, %s781_s17   ;;  %p591_p0 = pnand %p559_p6, %p913_p7 }
 0x1de   : > { %s473_s27 = scalar_lea.sflag [#allocation5], %s472_s6 }
 0x1df   : > { %p592_p2 = pneg %p591_p0 }
 0x1e1   : > { %776 = dma.done.wait (%p592_p2), %s473_s27, 128  }
 0x1e2   : > { %778 = vsyncadd (%p592_p2), %s473_s27, 4294967168  ;;  %s22_s22 = sadd.s32 1, %s801_s22   ;;  %s1007_s17 = smov %s785_s18 }
 0x1e3   : > { %p19_p5 = scmp.ge.s32.totalorder %s22_s22, 4   ;;  %s1008_s18 = smov %s789_s19 }
 0x1e4   : > { %s1009_s19 = smov %s911_s13  ;;  %s1010_s20 = smov %s797_s21 }
 0x1e5   : > { %s1011_s21 = smov %s1013_s7  ;;  %21 = sbr.rel (!%p19_p5) target bundleno = 9 (0x9), region = 85 }
 0x1ea   :  { %479 = vsyncpa [#allocation4], 1 }
 0x1eb   :  { %481 = vsyncpa [#allocation4 + $0x1], 1 }
 0x1ec   :  { %482 = vsyncpa [#allocation7], 1 }
 0x1ed   :  { %483 = vsyncpa [#allocation5], 1 }
 0x1ee   :  { %485 = vsyncpa [#allocation5 + $0x1], 1 }

</bundles_post_ra>
